<compile_context>
chip_gen: v7x
topology: tpu7x:2x2x1
jax: 0.10.0
libtpu: 0.0.40
codegen_flags: <defaults>
</compile_context>

<pallas_src>
import functools

import jax
import jax.numpy as jnp
from jax.experimental import pallas as pl
from jax.experimental.pallas import tpu as pltpu

LEAKY_RELU_SLOPE = 0.2
NEG_BIG = -1e30        # finite "masked" bias; avoids inf-inf -> NaN for isolated rows
TILE_Q_MAX = 512       # query-row tile (review sweet spot; halve for huge N on v7x)


def _gat_attention_kernel(e1_ref, adj_ref, e2_ref, hp_ref, out_ref, *,
                          n_heads, f_out):
    """One query tile: per-head masked softmax attention + (p @ hp)."""
    e1 = e1_ref[...]                                     # (TQ, H) f32

    for hd in range(n_heads):                            # H is small: static unroll;
        # per-head store keeps only one head's (TQ, N) temporaries live.
        e = e1[:, hd:hd + 1] + e2_ref[hd:hd + 1, :]      # (TQ, N) f32
        e = jnp.where(e > 0, e, LEAKY_RELU_SLOPE * e)    # LeakyReLU(0.2)

        # adjacency mask built per head from the int8 tile (hides under exp chain)
        mask = adj_ref[...].astype(jnp.int32) != 0       # (TQ, N)
        e = jnp.where(mask, e, NEG_BIG)

        m = jnp.max(e, axis=1, keepdims=True)            # row max (f32)
        p = jnp.exp(e - m)                               # un-normalised probs
        s = jnp.sum(p, axis=1, keepdims=True)            # >= 1 with self-loops

        hp_h = hp_ref[:, hd * f_out:(hd + 1) * f_out]    # (N, F_out) bf16, resident
        o = jnp.dot(p.astype(jnp.bfloat16), hp_h,
                    preferred_element_type=jnp.float32)  # MXU bf16, f32 accumulate
        o = o * pl.reciprocal(s, approx=True)            # deferred softmax norm (EUP)

        out_ref[:, hd * f_out:(hd + 1) * f_out] = o.astype(out_ref.dtype)


def graph_attention_layer(h, adjacency, w_stack, a_stack, *, final=False,
                          tile_q=None):
    """h: (N, F_in) f32; adjacency: (N, N) bool;
       w_stack: (H, F_in, F_out); a_stack: (H, 2, F_out) (PyTorch a^T per head)."""
    N, F_in = h.shape
    H, _, F_out = w_stack.shape

    a1 = a_stack[:, 0, :]                                 # (H, F_out)
    a2 = a_stack[:, 1, :]                                 # (H, F_out)

    # Cheap O(N*F) projections in the wrapper (tiny vs the O(N^2) attention work).
    w_cat = jnp.transpose(w_stack, (1, 0, 2)).reshape(F_in, H * F_out)
    hp_full = h @ w_cat                                   # (N, H*F_out) f32
    hp_heads = hp_full.reshape(N, H, F_out)
    e1 = jnp.einsum('nhf,hf->nh', hp_heads, a1)           # (N, H)  query term
    e2 = jnp.einsum('nhf,hf->hn', hp_heads, a2)           # (H, N)  key term

    hp_bf16 = hp_full.astype(jnp.bfloat16)                # MXU operand for p @ hp
    adj_i8 = adjacency.astype(jnp.int8)                   # 1 B/elem O(N^2) input

    if tile_q is None:
        tile_q = N if N <= TILE_Q_MAX else TILE_Q_MAX
    grid = (pl.cdiv(N, tile_q),)

    # VMEM estimate: double-buffered tiled operands + resident hp/e2 + the
    # per-head f32 (TQ, N) temporaries. Clamped to a range legal on every
    # generation (v7x: 64 MiB physical per TensorCore).
    est = (2 * tile_q * N * 1                # adjacency tile (int8), double-buffered
           + 2 * tile_q * H * 4              # e1 tile
           + 2 * tile_q * H * F_out * 4      # output tile
           + H * N * 4                       # e2 (resident)
           + N * H * F_out * 2               # hp (resident, bf16)
           + 2 * tile_q * N * 4)             # live f32 e/p temporaries
    vmem_limit = max(32 << 20, min(est * 3 // 2 + (2 << 20), 56 << 20))

    kernel = functools.partial(_gat_attention_kernel, n_heads=H, f_out=F_out)

    out = pl.pallas_call(
        kernel,
        out_shape=jax.ShapeDtypeStruct((N, H * F_out), jnp.float32),
        grid_spec=pltpu.PrefetchScalarGridSpec(
            num_scalar_prefetch=0,
            grid=grid,
            in_specs=[
                pl.BlockSpec((tile_q, H), lambda i: (i, 0)),        # e1  (query-tiled)
                pl.BlockSpec((tile_q, N), lambda i: (i, 0)),        # adj (query-tiled)
                pl.BlockSpec((H, N), lambda i: (0, 0)),             # e2  (resident)
                pl.BlockSpec((N, H * F_out), lambda i: (0, 0)),     # hp  (resident)
            ],
            out_specs=pl.BlockSpec((tile_q, H * F_out), lambda i: (i, 0)),
        ),
        compiler_params=pltpu.CompilerParams(
            dimension_semantics=("parallel",),
            vmem_limit_bytes=vmem_limit),
    )(e1, adj_i8, e2, hp_bf16)

    if final:
        # torch.stack(...).mean(dim=0): mean over heads.
        return out.reshape(N, H, F_out).mean(axis=1)      # (N, F_out)
    # torch.cat(h_list, dim=1): already the kernel's output layout.
    return out                                            # (N, H*F_out)


def _xavier_uniform(key, shape):
    # PyTorch xavier_uniform_ on a 2D tensor (rows, cols): fan_out=rows, fan_in=cols
    fan_out, fan_in = shape[-2], shape[-1]
    bound = jnp.sqrt(6.0 / (fan_in + fan_out))
    return jax.random.uniform(key, shape, jnp.float32, -bound, bound)


def _reference(h, adjacency, w_stack, a_stack, *, final=False):
    """Pure-JAX reference matching the PyTorch forward (dropout=identity)."""
    outs = []
    for hdx in range(w_stack.shape[0]):
        hp = h @ w_stack[hdx]                             # (N, F_out)
        a = a_stack[hdx]                                  # (2, F_out)
        e = hp @ a.T                                      # (N, 2)
        e1, e2 = e[:, 0:1], e[:, 1:2]
        E = e1 + e2.T
        E = jnp.where(E > 0, E, LEAKY_RELU_SLOPE * E)
        E = jnp.where(adjacency, E, -jnp.inf)
        A = jax.nn.softmax(E, axis=1)
        outs.append(A @ hp)
    stack = jnp.stack(outs)
    if final:
        return stack.mean(axis=0)
    return jnp.concatenate(outs, axis=1)


if __name__ == "__main__":
    N, F_in, F_out, H = 16, 32, 16, 4

    key = jax.random.PRNGKey(0)
    k_h, k_adj, k_w, k_a = jax.random.split(key, 4)

    h = jax.random.normal(k_h, (N, F_in), jnp.float32)

    # random adjacency with self-loops (guarantees no fully-masked softmax row)
    adjacency = jax.random.bernoulli(k_adj, 0.5, (N, N)) | jnp.eye(N, dtype=bool)

    # deterministic parameter init (xavier_uniform, shapes from __init__)
    w_keys = jax.random.split(k_w, H)
    a_keys = jax.random.split(k_a, H)
    # W: (in_features, out_features)
    w_stack = jnp.stack([_xavier_uniform(w_keys[i], (F_in, F_out)) for i in range(H)])
    # a: PyTorch shape (F_out, 2) -> stored transposed as (2, F_out)
    a_stack = jnp.stack([_xavier_uniform(a_keys[i], (F_out, 2)).T for i in range(H)])

    out = jax.block_until_ready(
        graph_attention_layer(h, adjacency, w_stack, a_stack, final=False))
    ref = _reference(h, adjacency, w_stack, a_stack, final=False)
    assert out.shape == (N, H * F_out)
    # p @ hp runs on the MXU in bf16 (f32 accumulate) -> tolerance sized for bf16
    assert jnp.allclose(out, ref, atol=3e-2, rtol=3e-2), "mismatch vs reference"

    # also exercise the `final=True` (mean over heads) path
    out_final = jax.block_until_ready(
        graph_attention_layer(h, adjacency, w_stack, a_stack, final=True))
    ref_final = _reference(h, adjacency, w_stack, a_stack, final=True)
    assert out_final.shape == (N, F_out)
    assert jnp.allclose(out_final, ref_final, atol=3e-2, rtol=3e-2)

    print("KERNEL_OK")
</pallas_src>

<mosaic_0001>
module attributes {stable_mosaic.version = 11 : i64} {
  func.func @_gat_attention_kernel(%arg0: i32, %arg1: memref<16x4xf32, #tpu.memory_space<vmem>>, %arg2: memref<16x16xi8, #tpu.memory_space<vmem>>, %arg3: memref<4x16xf32, #tpu.memory_space<vmem>>, %arg4: memref<16x64xbf16, #tpu.memory_space<vmem>>, %arg5: memref<16x64xf32, #tpu.memory_space<vmem>>) attributes {dimension_semantics = [#tpu.dimension_semantics<parallel>], iteration_bounds = array<i64: 1>, scalar_prefetch = 0 : i64, scratch_operands = 0 : i64, tpu.core_type = #tpu.core_type<tc>, window_params = [{transform_indices = @transform_0, window_bounds = array<i64: 16, 4>}, {transform_indices = @transform_1, window_bounds = array<i64: 16, 16>}, {pipeline_mode = #tpu.pipeline_mode<synchronous>, transform_indices = @transform_2, window_bounds = array<i64: 4, 16>}, {pipeline_mode = #tpu.pipeline_mode<synchronous>, transform_indices = @transform_3, window_bounds = array<i64: 16, 64>}, {transform_indices = @transform_4, window_bounds = array<i64: 16, 64>}]} {
    %c0 = arith.constant 0 : index
    %c0_0 = arith.constant 0 : index
    %0 = vector.load %arg1[%c0, %c0_0] : memref<16x4xf32, #tpu.memory_space<vmem>>, vector<16x4xf32>
    %1 = vector.extract_strided_slice %0 {offsets = [0, 0], sizes = [16, 1], strides = [1, 1]} : vector<16x4xf32> to vector<16x1xf32>
    %c0_1 = arith.constant 0 : index
    %c0_2 = arith.constant 0 : index
    %2 = vector.load %arg3[%c0_1, %c0_2] : memref<4x16xf32, #tpu.memory_space<vmem>>, vector<1x16xf32>
    %3 = vector.broadcast %1 : vector<16x1xf32> to vector<16x16xf32>
    %4 = vector.broadcast %2 : vector<1x16xf32> to vector<16x16xf32>
    %5 = arith.addf %3, %4 : vector<16x16xf32>
    %cst = arith.constant 0.000000e+00 : f32
    %6 = vector.broadcast %cst : f32 to vector<16x16xf32>
    %7 = arith.cmpf ogt, %5, %6 : vector<16x16xf32>
    %cst_3 = arith.constant 2.000000e-01 : f32
    %8 = vector.broadcast %cst_3 : f32 to vector<16x16xf32>
    %9 = arith.mulf %8, %5 : vector<16x16xf32>
    %10 = arith.select %7, %5, %9 : vector<16x16xi1>, vector<16x16xf32>
    %c0_4 = arith.constant 0 : index
    %c0_5 = arith.constant 0 : index
    %11 = vector.load %arg2[%c0_4, %c0_5] : memref<16x16xi8, #tpu.memory_space<vmem>>, vector<16x16xi8>
    %12 = arith.extsi %11 : vector<16x16xi8> to vector<16x16xi32>
    %c0_i32 = arith.constant 0 : i32
    %13 = vector.broadcast %c0_i32 : i32 to vector<16x16xi32>
    %14 = arith.cmpi ne, %12, %13 : vector<16x16xi32>
    %cst_6 = arith.constant -1.000000e+30 : f32
    %15 = vector.broadcast %cst_6 : f32 to vector<16x16xf32>
    %16 = arith.select %14, %10, %15 : vector<16x16xi1>, vector<16x16xf32>
    %cst_7 = arith.constant dense<0xFF800000> : vector<16xf32>
    %17 = vector.multi_reduction <maximumf>, %16, %cst_7 [1] : vector<16x16xf32> to vector<16xf32>
    %18 = vector.shape_cast %17 : vector<16xf32> to vector<16x1xf32>
    %19 = vector.broadcast %18 : vector<16x1xf32> to vector<16x16xf32>
    %20 = arith.subf %16, %19 : vector<16x16xf32>
    %21 = math.exp %20 : vector<16x16xf32>
    %cst_8 = arith.constant dense<0.000000e+00> : vector<16xf32>
    %22 = vector.multi_reduction <add>, %21, %cst_8 [1] : vector<16x16xf32> to vector<16xf32>
    %23 = vector.shape_cast %22 : vector<16xf32> to vector<16x1xf32>
    %c0_9 = arith.constant 0 : index
    %c0_10 = arith.constant 0 : index
    %24 = vector.load %arg4[%c0_9, %c0_10] : memref<16x64xbf16, #tpu.memory_space<vmem>>, vector<16x16xbf16>
    %25 = arith.truncf %21 : vector<16x16xf32> to vector<16x16xbf16>
    %cst_11 = arith.constant dense<0.000000e+00> : vector<16x16xf32>
    %26 = tpu.matmul %25, %24, %cst_11 {dimension_numbers = #tpu.dot_dimension_numbers<[1], [0], [0], [1], [0, 0, 1, 1], [], []>} : vector<16x16xbf16>, vector<16x16xbf16>, vector<16x16xf32> -> vector<16x16xf32>
    %27 = tpu.reciprocal %23 {approx = true} : vector<16x1xf32> -> vector<16x1xf32>
    %28 = vector.broadcast %27 : vector<16x1xf32> to vector<16x16xf32>
    %29 = arith.mulf %26, %28 : vector<16x16xf32>
    %c0_12 = arith.constant 0 : index
    %c0_13 = arith.constant 0 : index
    %30 = vector.load %arg5[%c0_12, %c0_13] : memref<16x64xf32, #tpu.memory_space<vmem>>, vector<16x16xf32>
    tpu.vector_store %arg5[%c0_12, %c0_13], %29 {strides = array<i32>} : memref<16x64xf32, #tpu.memory_space<vmem>>, vector<16x16xf32>,
    %31 = vector.extract_strided_slice %0 {offsets = [0, 1], sizes = [16, 1], strides = [1, 1]} : vector<16x4xf32> to vector<16x1xf32>
    %c1 = arith.constant 1 : index
    %c0_14 = arith.constant 0 : index
    %32 = vector.load %arg3[%c1, %c0_14] : memref<4x16xf32, #tpu.memory_space<vmem>>, vector<1x16xf32>
    %33 = vector.broadcast %31 : vector<16x1xf32> to vector<16x16xf32>
    %34 = vector.broadcast %32 : vector<1x16xf32> to vector<16x16xf32>
    %35 = arith.addf %33, %34 : vector<16x16xf32>
    %cst_15 = arith.constant 0.000000e+00 : f32
    %36 = vector.broadcast %cst_15 : f32 to vector<16x16xf32>
    %37 = arith.cmpf ogt, %35, %36 : vector<16x16xf32>
    %cst_16 = arith.constant 2.000000e-01 : f32
    %38 = vector.broadcast %cst_16 : f32 to vector<16x16xf32>
    %39 = arith.mulf %38, %35 : vector<16x16xf32>
    %40 = arith.select %37, %35, %39 : vector<16x16xi1>, vector<16x16xf32>
    %c0_17 = arith.constant 0 : index
    %c0_18 = arith.constant 0 : index
    %41 = vector.load %arg2[%c0_17, %c0_18] : memref<16x16xi8, #tpu.memory_space<vmem>>, vector<16x16xi8>
    %42 = arith.extsi %41 : vector<16x16xi8> to vector<16x16xi32>
    %c0_i32_19 = arith.constant 0 : i32
    %43 = vector.broadcast %c0_i32_19 : i32 to vector<16x16xi32>
    %44 = arith.cmpi ne, %42, %43 : vector<16x16xi32>
    %cst_20 = arith.constant -1.000000e+30 : f32
    %45 = vector.broadcast %cst_20 : f32 to vector<16x16xf32>
    %46 = arith.select %44, %40, %45 : vector<16x16xi1>, vector<16x16xf32>
    %cst_21 = arith.constant dense<0xFF800000> : vector<16xf32>
    %47 = vector.multi_reduction <maximumf>, %46, %cst_21 [1] : vector<16x16xf32> to vector<16xf32>
    %48 = vector.shape_cast %47 : vector<16xf32> to vector<16x1xf32>
    %49 = vector.broadcast %48 : vector<16x1xf32> to vector<16x16xf32>
    %50 = arith.subf %46, %49 : vector<16x16xf32>
    %51 = math.exp %50 : vector<16x16xf32>
    %cst_22 = arith.constant dense<0.000000e+00> : vector<16xf32>
    %52 = vector.multi_reduction <add>, %51, %cst_22 [1] : vector<16x16xf32> to vector<16xf32>
    %53 = vector.shape_cast %52 : vector<16xf32> to vector<16x1xf32>
    %c0_23 = arith.constant 0 : index
    %c16 = arith.constant 16 : index
    %54 = vector.load %arg4[%c0_23, %c16] : memref<16x64xbf16, #tpu.memory_space<vmem>>, vector<16x16xbf16>
    %55 = arith.truncf %51 : vector<16x16xf32> to vector<16x16xbf16>
    %cst_24 = arith.constant dense<0.000000e+00> : vector<16x16xf32>
    %56 = tpu.matmul %55, %54, %cst_24 {dimension_numbers = #tpu.dot_dimension_numbers<[1], [0], [0], [1], [0, 0, 1, 1], [], []>} : vector<16x16xbf16>, vector<16x16xbf16>, vector<16x16xf32> -> vector<16x16xf32>
    %57 = tpu.reciprocal %53 {approx = true} : vector<16x1xf32> -> vector<16x1xf32>
    %58 = vector.broadcast %57 : vector<16x1xf32> to vector<16x16xf32>
    %59 = arith.mulf %56, %58 : vector<16x16xf32>
    %c0_25 = arith.constant 0 : index
    %c16_26 = arith.constant 16 : index
    %60 = vector.load %arg5[%c0_25, %c16_26] : memref<16x64xf32, #tpu.memory_space<vmem>>, vector<16x16xf32>
    tpu.vector_store %arg5[%c0_25, %c16_26], %59 {strides = array<i32>} : memref<16x64xf32, #tpu.memory_space<vmem>>, vector<16x16xf32>,
    %61 = vector.extract_strided_slice %0 {offsets = [0, 2], sizes = [16, 1], strides = [1, 1]} : vector<16x4xf32> to vector<16x1xf32>
    %c2 = arith.constant 2 : index
    %c0_27 = arith.constant 0 : index
    %62 = vector.load %arg3[%c2, %c0_27] : memref<4x16xf32, #tpu.memory_space<vmem>>, vector<1x16xf32>
    %63 = vector.broadcast %61 : vector<16x1xf32> to vector<16x16xf32>
    %64 = vector.broadcast %62 : vector<1x16xf32> to vector<16x16xf32>
    %65 = arith.addf %63, %64 : vector<16x16xf32>
    %cst_28 = arith.constant 0.000000e+00 : f32
    %66 = vector.broadcast %cst_28 : f32 to vector<16x16xf32>
    %67 = arith.cmpf ogt, %65, %66 : vector<16x16xf32>
    %cst_29 = arith.constant 2.000000e-01 : f32
    %68 = vector.broadcast %cst_29 : f32 to vector<16x16xf32>
    %69 = arith.mulf %68, %65 : vector<16x16xf32>
    %70 = arith.select %67, %65, %69 : vector<16x16xi1>, vector<16x16xf32>
    %c0_30 = arith.constant 0 : index
    %c0_31 = arith.constant 0 : index
    %71 = vector.load %arg2[%c0_30, %c0_31] : memref<16x16xi8, #tpu.memory_space<vmem>>, vector<16x16xi8>
    %72 = arith.extsi %71 : vector<16x16xi8> to vector<16x16xi32>
    %c0_i32_32 = arith.constant 0 : i32
    %73 = vector.broadcast %c0_i32_32 : i32 to vector<16x16xi32>
    %74 = arith.cmpi ne, %72, %73 : vector<16x16xi32>
    %cst_33 = arith.constant -1.000000e+30 : f32
    %75 = vector.broadcast %cst_33 : f32 to vector<16x16xf32>
    %76 = arith.select %74, %70, %75 : vector<16x16xi1>, vector<16x16xf32>
    %cst_34 = arith.constant dense<0xFF800000> : vector<16xf32>
    %77 = vector.multi_reduction <maximumf>, %76, %cst_34 [1] : vector<16x16xf32> to vector<16xf32>
    %78 = vector.shape_cast %77 : vector<16xf32> to vector<16x1xf32>
    %79 = vector.broadcast %78 : vector<16x1xf32> to vector<16x16xf32>
    %80 = arith.subf %76, %79 : vector<16x16xf32>
    %81 = math.exp %80 : vector<16x16xf32>
    %cst_35 = arith.constant dense<0.000000e+00> : vector<16xf32>
    %82 = vector.multi_reduction <add>, %81, %cst_35 [1] : vector<16x16xf32> to vector<16xf32>
    %83 = vector.shape_cast %82 : vector<16xf32> to vector<16x1xf32>
    %c0_36 = arith.constant 0 : index
    %c32 = arith.constant 32 : index
    %84 = vector.load %arg4[%c0_36, %c32] : memref<16x64xbf16, #tpu.memory_space<vmem>>, vector<16x16xbf16>
    %85 = arith.truncf %81 : vector<16x16xf32> to vector<16x16xbf16>
    %cst_37 = arith.constant dense<0.000000e+00> : vector<16x16xf32>
    %86 = tpu.matmul %85, %84, %cst_37 {dimension_numbers = #tpu.dot_dimension_numbers<[1], [0], [0], [1], [0, 0, 1, 1], [], []>} : vector<16x16xbf16>, vector<16x16xbf16>, vector<16x16xf32> -> vector<16x16xf32>
    %87 = tpu.reciprocal %83 {approx = true} : vector<16x1xf32> -> vector<16x1xf32>
    %88 = vector.broadcast %87 : vector<16x1xf32> to vector<16x16xf32>
    %89 = arith.mulf %86, %88 : vector<16x16xf32>
    %c0_38 = arith.constant 0 : index
    %c32_39 = arith.constant 32 : index
    %90 = vector.load %arg5[%c0_38, %c32_39] : memref<16x64xf32, #tpu.memory_space<vmem>>, vector<16x16xf32>
    tpu.vector_store %arg5[%c0_38, %c32_39], %89 {strides = array<i32>} : memref<16x64xf32, #tpu.memory_space<vmem>>, vector<16x16xf32>,
    %91 = vector.extract_strided_slice %0 {offsets = [0, 3], sizes = [16, 1], strides = [1, 1]} : vector<16x4xf32> to vector<16x1xf32>
    %c3 = arith.constant 3 : index
    %c0_40 = arith.constant 0 : index
    %92 = vector.load %arg3[%c3, %c0_40] : memref<4x16xf32, #tpu.memory_space<vmem>>, vector<1x16xf32>
    %93 = vector.broadcast %91 : vector<16x1xf32> to vector<16x16xf32>
    %94 = vector.broadcast %92 : vector<1x16xf32> to vector<16x16xf32>
    %95 = arith.addf %93, %94 : vector<16x16xf32>
    %cst_41 = arith.constant 0.000000e+00 : f32
    %96 = vector.broadcast %cst_41 : f32 to vector<16x16xf32>
    %97 = arith.cmpf ogt, %95, %96 : vector<16x16xf32>
    %cst_42 = arith.constant 2.000000e-01 : f32
    %98 = vector.broadcast %cst_42 : f32 to vector<16x16xf32>
    %99 = arith.mulf %98, %95 : vector<16x16xf32>
    %100 = arith.select %97, %95, %99 : vector<16x16xi1>, vector<16x16xf32>
    %c0_43 = arith.constant 0 : index
    %c0_44 = arith.constant 0 : index
    %101 = vector.load %arg2[%c0_43, %c0_44] : memref<16x16xi8, #tpu.memory_space<vmem>>, vector<16x16xi8>
    %102 = arith.extsi %101 : vector<16x16xi8> to vector<16x16xi32>
    %c0_i32_45 = arith.constant 0 : i32
    %103 = vector.broadcast %c0_i32_45 : i32 to vector<16x16xi32>
    %104 = arith.cmpi ne, %102, %103 : vector<16x16xi32>
    %cst_46 = arith.constant -1.000000e+30 : f32
    %105 = vector.broadcast %cst_46 : f32 to vector<16x16xf32>
    %106 = arith.select %104, %100, %105 : vector<16x16xi1>, vector<16x16xf32>
    %cst_47 = arith.constant dense<0xFF800000> : vector<16xf32>
    %107 = vector.multi_reduction <maximumf>, %106, %cst_47 [1] : vector<16x16xf32> to vector<16xf32>
    %108 = vector.shape_cast %107 : vector<16xf32> to vector<16x1xf32>
    %109 = vector.broadcast %108 : vector<16x1xf32> to vector<16x16xf32>
    %110 = arith.subf %106, %109 : vector<16x16xf32>
    %111 = math.exp %110 : vector<16x16xf32>
    %cst_48 = arith.constant dense<0.000000e+00> : vector<16xf32>
    %112 = vector.multi_reduction <add>, %111, %cst_48 [1] : vector<16x16xf32> to vector<16xf32>
    %113 = vector.shape_cast %112 : vector<16xf32> to vector<16x1xf32>
    %c0_49 = arith.constant 0 : index
    %c48 = arith.constant 48 : index
    %114 = vector.load %arg4[%c0_49, %c48] : memref<16x64xbf16, #tpu.memory_space<vmem>>, vector<16x16xbf16>
    %115 = arith.truncf %111 : vector<16x16xf32> to vector<16x16xbf16>
    %cst_50 = arith.constant dense<0.000000e+00> : vector<16x16xf32>
    %116 = tpu.matmul %115, %114, %cst_50 {dimension_numbers = #tpu.dot_dimension_numbers<[1], [0], [0], [1], [0, 0, 1, 1], [], []>} : vector<16x16xbf16>, vector<16x16xbf16>, vector<16x16xf32> -> vector<16x16xf32>
    %117 = tpu.reciprocal %113 {approx = true} : vector<16x1xf32> -> vector<16x1xf32>
    %118 = vector.broadcast %117 : vector<16x1xf32> to vector<16x16xf32>
    %119 = arith.mulf %116, %118 : vector<16x16xf32>
    %c0_51 = arith.constant 0 : index
    %c48_52 = arith.constant 48 : index
    %120 = vector.load %arg5[%c0_51, %c48_52] : memref<16x64xf32, #tpu.memory_space<vmem>>, vector<16x16xf32>
    tpu.vector_store %arg5[%c0_51, %c48_52], %119 {strides = array<i32>} : memref<16x64xf32, #tpu.memory_space<vmem>>, vector<16x16xf32>,
    return
  }
  func.func @transform_0(%arg0: i32) -> (i32, i32) {
    %c0_i32 = arith.constant 0 : i32
    %c0_i32_0 = arith.constant 0 : i32
    return %arg0, %c0_i32 : i32, i32
  }
  func.func @transform_1(%arg0: i32) -> (i32, i32) {
    %c0_i32 = arith.constant 0 : i32
    %c0_i32_0 = arith.constant 0 : i32
    return %arg0, %c0_i32 : i32, i32
  }
  func.func @transform_2(%arg0: i32) -> (i32, i32) {
    %c0_i32 = arith.constant 0 : i32
    %c0_i32_0 = arith.constant 0 : i32
    %c0_i32_1 = arith.constant 0 : i32
    return %c0_i32, %c0_i32_0 : i32, i32
  }
  func.func @transform_3(%arg0: i32) -> (i32, i32) {
    %c0_i32 = arith.constant 0 : i32
    %c0_i32_0 = arith.constant 0 : i32
    %c0_i32_1 = arith.constant 0 : i32
    return %c0_i32, %c0_i32_0 : i32, i32
  }
  func.func @transform_4(%arg0: i32) -> (i32, i32) {
    %c0_i32 = arith.constant 0 : i32
    %c0_i32_0 = arith.constant 0 : i32
    return %arg0, %c0_i32 : i32, i32
  }
}

</mosaic_0001>

<bundles_post_ra>
// kernel: tpu_custom_call.1
= control target key start
LH: loop header
LB: loop body
LE: loop exit
PB: predicated region body
PF: predicated region fallthrough
CT: control target
= control target key end

     0   :  { %v638_v1 = vmov 1   ;;  %v639_v2 = vmov 0   ;;  %s794_s0 = inlined_call_operand.vmem [shape: f32[16,4], index: 0, kind: input, shape index: {}]   ;;  %s795_s1 = inlined_call_operand.vmem [shape: s8[16,16], index: 1, kind: input, shape index: {}]   ;;  %s796_s2 = inlined_call_operand.vmem [shape: f32[4,16], index: 2, kind: input, shape index: {}]   ;;  %s797_s3 = inlined_call_operand.vmem [shape: bf16[16,64], index: 3, kind: input, shape index: {}]   ;;  %s798_s4 = inlined_call_operand.hbm [shape: f32[16,64], index: 4, kind: output, shape index: {}]  }
   0x1   :  { %v19_v0 = vld [vmem:[%s794_s0] sm:$0xff]  ;;  %573 = vset.pattern.permute.xlu1 %v638_v1  ;;  %572 = vset.pattern.permute.xlu0 %v639_v2  ;;  %v20_v3 = vld [vmem:[%s794_s0 + $0x8] sm:$0xff] }
   0x2   :  { %132 = vperm.xlu1 %573, %v19_v0   ;;  %24 = vperm.xlu0 %572, %v19_v0  }
   0x3   :  { %9 = vsyncpa [#allocation3], 0  ;;  %v640_v4 = vmov 2   ;;  %v641_v5 = vmov 3   ;;  %v578_v6 = vld [vmem:[%s797_s3] sm:$0xff]   ;;  %s642_s21 = smov 112  }
   0x4   :  { %v643_v7 = vmov 0.0   ;;  %v510_v8 = vld [vmem:[%s795_s1] sm:$0xf]   ;;  %vm52_vm3 = vcmask 130048   ;;  %s644_s11 = smov 80   ;;  %s646_s16 = smov 96  }
   0x5   :  { %539 = vmatprep.subr.bf16.mxu1 %v643_v7  ;;  %533 = vmatprep.subr.bf16.mxu0 %v643_v7  ;;  %v514_v9 = vld [vmem:[%s795_s1] sm:$0xf]   ;;  %v511_v12 = vunpack.c.0.s8 %v510_v8  ;;  %v512_v20 = vunpack.c.1.s8 %v510_v8  ;;  %s648_s17 = smov 32   ;;  %s649_s18 = smov 48  }
   0x6   :  { %136 = vperm.xlu1 %573, %v20_v3   ;;  %29 = vperm.xlu0 %572, %v20_v3   ;;  %v500_v10 = vld [vmem:[%s796_s2 + $0x1] ss:$0 sm:$0xff]  ;;  %v497_v11 = vld [vmem:[%s796_s2] ss:$0 sm:$0xff]  ;;  %v515_v15 = vunpack.c.0.s8 %v514_v9  ;;  %v516_v25 = vunpack.c.1.s8 %v514_v9  ;;  %v503_v32 = vld [vmem:[%s796_s2 + $0x2] ss:$0 sm:$0xff] }
   0x7   :  { %v518_v18 = vld [vmem:[%s795_s1] sm:$0xf]   ;;  %vm704_vm0 = vcmp.ne.s32.totalorder %v511_v12, 0  ;;  %vm49_vm5 = vcmp.ne.s32.totalorder %v512_v20, 0  ;;  %s650_s19 = smov [#allocation2]  }
   0x8   :  { %vm155_vm4 = vcmp.ne.s32.totalorder %v515_v15, 0  ;;  %v519_v26 = vunpack.c.0.s8 %v518_v18  ;;  %v522_v33 = vld [vmem:[%s795_s1] sm:$0xf]   ;;  %vm156_vm8 = vcmp.ne.s32.totalorder %v516_v25, 0  ;;  %v520_v43 = vunpack.c.1.s8 %v518_v18  ;;  %s486_s20 = sshll.u32 %s650_s19, 4  ;;  %s487_s20 = int_to_ptr.vmem [resolvable:$true] %s486_s20 }
   0x9   :  { %v523_v47 = vunpack.c.0.s8 %v522_v33  ;;  %v506_v50 = vld [vmem:[%s796_s2 + $0x3] ss:$0 sm:$0xff]  ;;  %v524_v52 = vunpack.c.1.s8 %v522_v33  ;;  %p619_p1 = scmp.lt.s32.totalorder %s487_s20, %s487_s20 }
   0xa   :  { %575 = vset.pattern.permute.xlu1 %v640_v4  ;;  %574 = vset.pattern.permute.xlu0 %v640_v4  ;;  %vm722_vm9 = vcmp.ne.s32.totalorder %v519_v26, 0  ;;  %vm273_vm12 = vcmp.ne.s32.totalorder %v520_v43, 0  ;;  %v580_v12 = vld [vmem:[%s797_s3] sm:$0xff]  }
   0xb   :  { %253 = vperm.xlu1 %575, %v20_v3   ;;  %249 = vperm.xlu0 %574, %v19_v0   ;;  %vm389_vm13 = vcmp.ne.s32.totalorder %v523_v47, 0  ;;  %vm390_vm14 = vcmp.ne.s32.totalorder %v524_v52, 0 }
   0xf   :  { %576 = vset.pattern.permute.xlu1 %v641_v5  ;;  %577 = vset.pattern.permute.xlu0 %v641_v5 }
  0x10   :  { %366 = vperm.xlu1 %576, %v19_v0   ;;  %370 = vperm.xlu0 %577, %v20_v3  }
  0x14   :  { %185 = vrot.lane.b32.xlu1 %v578_v6, %s642_s21  ;;  %s614_s21 = scalar_lea.vmem %s487_s20, 256 }
  0x15   :  { %p615_p0 = scmp.ne.s32.totalorder %s487_s20, %s614_s21  ;;  %p620_p2 = scmp.lt.s32.totalorder %s614_s21, %s614_s21 }
  0x17   :  { %p621_p3 = por %p620_p2, %p619_p1 }
  0x19   :  { %p622_p4 = pnand %p621_p3, %p615_p0 }
  0x81   :  { %v133_v13 = vpop.permute.xlu1 %132  ;;  %v25_v14 = vpop.permute.xlu0 %24 }
  0x82   :  { %v143_v16 = vadd.f32 %v500_v10, %v133_v13  ;;  %v36_v17 = vadd.f32 %v497_v11, %v25_v14  ;;  %v581_v13 = vld [vmem:[%s797_s3] sm:$0xff]  }
  0x83   :  { %534 = vmatpush3.bf16.msra.mxu0 %v581_v13  ;;  %v579_v14 = vld [vmem:[%s797_s3] sm:$0xff]   ;;  %s647_s3 = smov 16  }
  0x84   :  { %v147_v21 = vmul.f32 0.2, %v143_v16  ;;  %v40_v22 = vmul.f32 0.2, %v36_v17  ;;  %vm38_vm1 = vcmp.gt.f32.partialorder %v36_v17, 0.0  ;;  %vm145_vm2 = vcmp.gt.f32.partialorder %v143_v16, 0.0  ;;  %545 = vmatprep.subr.bf16.mxu0 %v643_v7 }
  0x85   :  { %v137_v23 = vpop.permute.xlu1 %136  ;;  %v30_v24 = vpop.permute.xlu0 %29 }
  0x86   :  { %v144_v27 = vadd.f32 %v500_v10, %v137_v23  ;;  %v37_v28 = vadd.f32 %v497_v11, %v30_v24  ;;  %v42_v29 = vsel %vm38_vm1, %v36_v17, %v40_v22  ;;  %v149_v30 = vsel %vm145_vm2, %v143_v16, %v147_v21 }
  0x87   :  { %v710_v31 = vsel %vm704_vm0, %v42_v29, -1e+30  ;;  %v720_v37 = vsel %vm155_vm4, %v149_v30, -1e+30  ;;  %vm645_vm1 = vmmov 0   ;;  %vm244_vm2 = vcmask 261248  }
  0x88   :  { %v148_v34 = vmul.f32 0.2, %v144_v27  ;;  %v41_v35 = vmul.f32 0.2, %v37_v28  ;;  %v53_v36 = vsel %vm52_vm3, %v710_v31, -inf  ;;  %vm39_vm6 = vcmp.gt.f32.partialorder %v37_v28, 0.0  ;;  %535 = vmatprep.mubr.msk.bf16.mxu0 %vm645_vm1, %v643_v7  ;;  %541 = vmatprep.mubr.msk.bf16.mxu1 %vm645_vm1, %v643_v7 }
  0x89   :  { %54 = vmax.xlane.f32.xlu1 %v53_v36  ;;  %vm146_vm7 = vcmp.gt.f32.partialorder %v144_v27, 0.0  ;;  %v159_v48 = vsel %vm52_vm3, %v720_v37, -inf  ;;  %vm478_vm4 = vcmask 523648  }
  0x8a   :  { %v254_v38 = vpop.permute.xlu1 %253  ;;  %v250_v39 = vpop.permute.xlu0 %249  ;;  %v43_v40 = vsel %vm39_vm6, %v37_v28, %v41_v35  ;;  %v150_v41 = vsel %vm146_vm7, %v144_v27, %v148_v34 }
  0x8b   :  { %v261_v44 = vadd.f32 %v503_v32, %v254_v38  ;;  %v260_v45 = vadd.f32 %v503_v32, %v250_v39  ;;  %v726_v46 = vsel %vm49_vm5, %v43_v40, -1e+30  ;;  %v735_v51 = vsel %vm156_vm8, %v150_v41, -1e+30 }
  0x8c   :  { %v56_v49 = vsel %vm52_vm3, %v726_v46, -inf  ;;  %v162_v61 = vsel %vm52_vm3, %v735_v51, -inf }
  0x8d   :  { %v265_v53 = vmul.f32 0.2, %v261_v44  ;;  %v264_v54 = vmul.f32 0.2, %v260_v45  ;;  %160 = vmax.xlane.f32.xlu1 %v159_v48  ;;  %57 = vmax.xlane.f32.xlu0 %v56_v49  ;;  %vm262_vm10 = vcmp.gt.f32.partialorder %v260_v45, 0.0  ;;  %vm263_vm11 = vcmp.gt.f32.partialorder %v261_v44, 0.0 }
  0x8f   :  { %v367_v55 = vpop.permute.xlu1 %366  ;;  %v371_v56 = vpop.permute.xlu0 %370  ;;  %v266_v57 = vsel %vm262_vm10, %v260_v45, %v264_v54  ;;  %v267_v58 = vsel %vm263_vm11, %v261_v44, %v265_v53 }
  0x90   :  { %v377_v59 = vadd.f32 %v506_v50, %v367_v55  ;;  %v378_v60 = vadd.f32 %v506_v50, %v371_v56  ;;  %v274_v62 = vsel %vm722_vm9, %v266_v57, -1e+30  ;;  %v275_v0 = vsel %vm273_vm12, %v267_v58, -1e+30 }
  0x91   :  { %163 = vmax.xlane.f32.xlu0 %v162_v61  ;;  %v276_v63 = vsel %vm52_vm3, %v274_v62, -inf  ;;  %v279_v4 = vsel %vm52_vm3, %v275_v0, -inf }
  0x92   :  { %v381_v1 = vmul.f32 0.2, %v377_v59  ;;  %v382_v2 = vmul.f32 0.2, %v378_v60  ;;  %277 = vmax.xlane.f32.xlu1 %v276_v63  ;;  %vm379_vm15 = vcmp.gt.f32.partialorder %v377_v59, 0.0  ;;  %vm380_vm0 = vcmp.gt.f32.partialorder %v378_v60, 0.0 }
  0x93   :  { %v186_v3 = vpop.permute.xlu1 %185 }
  0x94   :  { %v383_v5 = vsel %vm379_vm15, %v377_v59, %v381_v1  ;;  %v384_v6 = vsel %vm380_vm0, %v378_v60, %v382_v2  ;;  %540 = vmatpush3.bf16.msra.mxu1 %v186_v3 }
  0x95   :  { %280 = vmax.xlane.f32.xlu0 %v279_v4  ;;  %v391_v8 = vsel %vm389_vm13, %v383_v5, -1e+30  ;;  %v392_v9 = vsel %vm390_vm14, %v384_v6, -1e+30  ;;  %551 = vmatprep.subr.bf16.mxu1 %v643_v7 }
  0x96   :  { %v393_v10 = vsel %vm52_vm3, %v391_v8, -inf  ;;  %v396_v11 = vsel %vm52_vm3, %v392_v9, -inf }
  0x97   :  { %394 = vmax.xlane.f32.xlu1 %v393_v10 }
  0x99   :  { %397 = vmax.xlane.f32.xlu0 %v396_v11 }
  0xa8   :  { %419 = vrot.lane.b32.xlu1 %v580_v12, %s644_s11 }
  0xaf   :  { %302 = vrot.lane.b32.xlu0 %v579_v14, %s646_s16 }
 0x116   :  { %v55_v15 = vpop.xlane.xlu1 %54 }
 0x117   :  { %v59_v16 = vsub.f32 %v710_v31, %v55_v15 }
 0x119   :  { %v61_v17 = vmul.f32 1.442695, %v59_v16 }
 0x11a   :  { %v161_v18 = vpop.xlane.xlu1 %160  ;;  %v58_v19 = vpop.xlane.xlu0 %57 }
 0x11b   :  { %v165_v20 = vsub.f32 %v720_v37, %v161_v18  ;;  %v60_v21 = vsub.f32 %v726_v46, %v58_v19  ;;  %582 = vpow2.f32 %v61_v17 }
 0x11d   :  { %v167_v22 = vmul.f32 1.442695, %v165_v20  ;;  %v63_v23 = vmul.f32 1.442695, %v60_v21 }
 0x11e   :  { %v164_v24 = vpop.xlane.xlu0 %163 }
 0x11f   :  { %584 = vpow2.f32 %v167_v22  ;;  %v166_v25 = vsub.f32 %v735_v51, %v164_v24  ;;  %v278_v26 = vpop.xlane.xlu1 %277 }
 0x120   :  { %586 = vpow2.f32 %v63_v23  ;;  %v282_v27 = vsub.f32 %v274_v62, %v278_v26 }
 0x121   :  { %v169_v28 = vmul.f32 1.442695, %v166_v25 }
 0x122   :  { %v284_v29 = vmul.f32 1.442695, %v282_v27  ;;  %v281_v30 = vpop.xlane.xlu0 %280 }
 0x123   :  { %588 = vpow2.f32 %v169_v28  ;;  %v283_v31 = vsub.f32 %v275_v0, %v281_v30 }
 0x124   :  { %v395_v32 = vpop.xlane.xlu1 %394  ;;  %590 = vpow2.f32 %v284_v29 }
 0x125   :  { %v286_v33 = vmul.f32 1.442695, %v283_v31  ;;  %v399_v34 = vsub.f32 %v391_v8, %v395_v32  ;;  %v583_v38 = vpop.eup %582 }
 0x126   :  { %v398_v35 = vpop.xlane.xlu0 %397 }
 0x127   :  { %592 = vpow2.f32 %v286_v33  ;;  %v401_v36 = vmul.f32 1.442695, %v399_v34  ;;  %v400_v37 = vsub.f32 %v392_v9, %v398_v35 }
 0x128   :  { %v420_v46 = vpop.permute.xlu1 %419 }
 0x129   :  { %v585_v39 = vpop.eup %584  ;;  %594 = vpow2.f32 %v401_v36  ;;  %v403_v40 = vmul.f32 1.442695, %v400_v37 }
 0x12a   :  { %v587_v41 = vpop.eup %586  ;;  %v171_v42 = vsel %vm52_vm3, %v585_v39, 0.0  ;;  %v303_v43 = vpop.permute.xlu0 %302 }
 0x12b   :  { %596 = vpow2.f32 %v403_v40  ;;  %172 = vadd.xlane.f32.xlu1 %v171_v42  ;;  %v73_v44 = vpack.c.bf16 %v587_v41, %v583_v38  ;;  %v68_v59 = vsel %vm52_vm3, %v587_v41, 0.0 }
 0x12d   :  { %v589_v45 = vpop.eup %588  ;;  %536 = vmatmul.mubr.msk.bf16.vlgmr.msra.gmra.mrb[0].mxu0 %vm52_vm3, %v73_v44 }
 0x12e   :  { %546 = vmatpush3.bf16.msra.mxu0 %v303_v43  ;;  %v174_v47 = vsel %vm52_vm3, %v589_v45, 0.0  ;;  %v179_v48 = vpack.c.bf16 %v589_v45, %v585_v39  ;;  %547 = vmatprep.mubr.msk.bf16.mxu0 %vm645_vm1, %v643_v7  ;;  %v591_v49 = vpop.eup %590 }
 0x12f   :  { %175 = vadd.xlane.f32.xlu0 %v174_v47  ;;  %v288_v51 = vsel %vm52_vm3, %v591_v49, 0.0 }
 0x130   :  { %542 = vmatmul.mubr.msk.bf16.vlgmr.msra.gmra.mrb[0].mxu1 %vm52_vm3, %v179_v48 }
 0x131   :  { %v593_v50 = vpop.eup %592  ;;  %552 = vmatpush3.bf16.msra.mxu1 %v420_v46  ;;  %553 = vmatprep.mubr.msk.bf16.mxu1 %vm645_vm1, %v643_v7  ;;  %v65_v7 = vsel %vm52_vm3, %v583_v38, 0.0 }
 0x132   :  { %v291_v52 = vsel %vm52_vm3, %v593_v50, 0.0  ;;  %v296_v53 = vpack.c.bf16 %v593_v50, %v591_v49 }
 0x133   :  { %v595_v54 = vpop.eup %594  ;;  %289 = vadd.xlane.f32.xlu0 %v288_v51  ;;  %292 = vadd.xlane.f32.xlu1 %v291_v52 }
 0x134   :  { %v405_v56 = vsel %vm52_vm3, %v595_v54, 0.0 }
 0x135   :  { %v597_v55 = vpop.eup %596  ;;  %548 = vmatmul.mubr.msk.bf16.vlgmr.msra.gmra.mrb[4].mxu0 %vm52_vm3, %v296_v53 }
 0x136   :  { %v408_v57 = vsel %vm52_vm3, %v597_v55, 0.0  ;;  %v413_v58 = vpack.c.bf16 %v597_v55, %v595_v54 }
 0x137   :  { %406 = vadd.xlane.f32.xlu0 %v405_v56  ;;  %409 = vadd.xlane.f32.xlu1 %v408_v57 }
 0x138   :  { %554 = vmatmul.mubr.msk.bf16.vlgmr.msra.gmra.mrb[4].mxu1 %vm52_vm3, %v413_v58 }
 0x13b   :  { %66 = vadd.xlane.f32.xlu0 %v65_v7  ;;  %69 = vadd.xlane.f32.xlu1 %v68_v59 }
 0x1b8   :  { %v173_v61 = vpop.xlane.xlu1 %172 }
 0x1bc   :  { %v176_v60 = vpop.xlane.xlu0 %175 }
 0x1c0   :  { %v290_v62 = vpop.xlane.xlu0 %289  ;;  %v293_v63 = vpop.xlane.xlu1 %292 }
 0x1c4   :  { %v407_v0 = vpop.xlane.xlu0 %406  ;;  %v410_v1 = vpop.xlane.xlu1 %409 }
 0x1c8   :  { %v67_v2 = vpop.xlane.xlu0 %66  ;;  %v70_v3 = vpop.xlane.xlu1 %69 }
 0x1c9   :  { %598 = vrcp.f32 %v67_v2 }
 0x1ca   :  { %600 = vrcp.f32 %v70_v3 }
 0x1cb   :  { %602 = vrcp.f32 %v173_v61 }
 0x1cc   :  { %604 = vrcp.f32 %v176_v60 }
 0x1cd   :  { %606 = vrcp.f32 %v290_v62 }
 0x1ce   :  { %608 = vrcp.f32 %v293_v63 }
 0x1cf   :  { %610 = vrcp.f32 %v410_v1 }
 0x1d0   :  { %612 = vrcp.f32 %v407_v0 }
 0x1d3   :  { %v599_v4 = vpop.eup %598 }
 0x1d4   :  { %v601_v9 = vpop.eup %600 }
 0x1d5   :  { %v603_v11 = vpop.eup %602 }
 0x1d6   :  { %v605_v17 = vpop.eup %604 }
 0x1d7   :  { %v607_v22 = vpop.eup %606 }
 0x1d8   :  { %v609_v24 = vpop.eup %608 }
 0x1d9   :  { %v611_v30 = vpop.eup %610 }
 0x1da   :  { %v613_v32 = vpop.eup %612 }
 0x200   :  { %v117_v5 = vpop.f32.mrb[0].mxu0 }
 0x201   :  { %v126_v6 = vmul.f32 %v599_v4, %v117_v5  ;;  %v537_v8 = vpop.f32.mrb[1].mxu0 }
 0x202   :  { %v120_v10 = vpop.f32.mrb[2].mxu0 }
 0x203   :  { %128 = vst.msk [vmem:[#allocation2] sm:$0xff] %vm52_vm3, %v126_v6  ;;  %v127_v12 = vmul.f32 %v601_v9, %v120_v10  ;;  %v538_v13 = vpop.f32.mrb[3].mxu0  ;;  %v225_v14 = vpop.f32.mrb[0].mxu1 }
 0x204   :  { %v234_v15 = vmul.f32 %v603_v11, %v225_v14  ;;  %v543_v16 = vpop.f32.mrb[1].mxu1 }
 0x205   :  { %129 = vst.msk [vmem:[#allocation2 + $0x8] sm:$0xff] %vm52_vm3, %v127_v12  ;;  %v228_v18 = vpop.f32.mrb[2].mxu1  ;;  %vm361_vm3 = vcmask 392448  }
 0x206   :  { %v235_v19 = vmul.f32 %v605_v17, %v228_v18  ;;  %v544_v20 = vpop.f32.mrb[3].mxu1  ;;  %238 = vrot.lane.b32.xlu0 %v234_v15, %s647_s3 }
 0x208   :  { %v342_v21 = vpop.f32.mrb[4].mxu0  ;;  %240 = vrot.lane.b32.xlu1 %v235_v19, %s647_s3 }
 0x209   :  { %v549_v23 = vpop.f32.mrb[5].mxu0  ;;  %v351_v25 = vmul.f32 %v607_v22, %v342_v21 }
 0x20a   :  { %v345_v26 = vpop.f32.mrb[6].mxu0 }
 0x20b   :  { %v352_v27 = vmul.f32 %v609_v24, %v345_v26  ;;  %v550_v28 = vpop.f32.mrb[7].mxu0  ;;  %v459_v29 = vpop.f32.mrb[4].mxu1 }
 0x20c   :  { %v555_v31 = vpop.f32.mrb[5].mxu1  ;;  %355 = vrot.lane.b32.xlu1 %v351_v25, %s648_s17  ;;  %v468_v34 = vmul.f32 %v613_v32, %v459_v29 }
 0x20d   :  { %357 = vrot.lane.b32.xlu0 %v352_v27, %s648_s17  ;;  %v462_v33 = vpop.f32.mrb[6].mxu1 }
 0x20e   :  { %v469_v35 = vmul.f32 %v611_v30, %v462_v33  ;;  %v556_v36 = vpop.f32.mrb[7].mxu1 }
 0x210   :  { %472 = vrot.lane.b32.xlu1 %v468_v34, %s649_s18 }
 0x211   :  { %474 = vrot.lane.b32.xlu0 %v469_v35, %s649_s18 }
 0x278   :  { %v239_v37 = vpop.permute.xlu0 %238 }
 0x279   :  { %245 = vst.msk [vmem:[#allocation2] sm:$0xff] %vm244_vm2, %v239_v37 }
 0x27a   :  { %v241_v38 = vpop.permute.xlu1 %240 }
 0x27b   :  { %246 = vst.msk [vmem:[#allocation2 + $0x8] sm:$0xff] %vm244_vm2, %v241_v38 }
 0x27e   :  { %v356_v39 = vpop.permute.xlu1 %355 }
 0x27f   :  { %362 = vst.msk [vmem:[#allocation2] sm:$0xff] %vm361_vm3, %v356_v39  ;;  %v358_v40 = vpop.permute.xlu0 %357 }
 0x280   :  { %363 = vst.msk [vmem:[#allocation2 + $0x8] sm:$0xff] %vm361_vm3, %v358_v40 }
 0x282   :  { %v473_v41 = vpop.permute.xlu1 %472 }
 0x283   :  { %479 = vst.msk [vmem:[#allocation2] sm:$0xff] %vm478_vm4, %v473_v41  ;;  %v475_v42 = vpop.permute.xlu0 %474 }
 0x284   :  { %480 = vst.msk [vmem:[#allocation2 + $0x8] sm:$0xff] %vm478_vm4, %v475_v42 }
 0x285   :  { %625 = shalt.err (!%p622_p4)
}
 0x286   :  { %s626_s23 = scalar_lea.hbm %s798_s4, 256 }
 0x287   :  { %p627_p5 = scmp.ne.s32.totalorder %s798_s4, %s626_s23  ;;  %p630_p6 = scmp.lt.u32.totalorder %s626_s23, %s798_s4 }
 0x289   :  { %p632_p7 = pnand %p630_p6, %p627_p5 }
 0x28b   :  { %635 = shalt.err (!%p632_p7)
}
 0x28c   :  { %s651_s28 = smov 128   ;;  %s652_s29 = smov 8  }
 0x28d   :  { %492 = dma.vmem_to_hbm [thread:$0]  %s487_s20, 256, %s798_s4, [#allocation3], %s651_s28, %s651_s28, %s652_s29  }
 0x28e   :  { %636 = dma.done.wait [#allocation3], 256  }
 0x28f   :  { %637 = vsyncadd [#allocation3], 4294967040 }
 0x290   :  { %496 = vsyncpa [#allocation3], 1 }

</bundles_post_ra>
